<compile_context>
chip_gen: v7x
topology: tpu7x:2x2x1
jax: 0.10.0
libtpu: 0.0.40
codegen_flags: <defaults>
</compile_context>

<pallas_src>
import jax
import jax.numpy as jnp
import numpy as np
from jax.experimental import pallas as pl
from jax.experimental.pallas import tpu as pltpu


# ----------------------------------------------------------------------------
# Kernel
# ----------------------------------------------------------------------------
def _make_kernel(act: str, c_out: int, kt: int, c_in: int, T: int, Np: int,
                 b_blk: int, dtype):
    pad_t = (kt - 1) // 2
    L = T * Np          # flattened (time, node) lane axis

    def kernel(x_ref, w_ref, b_ref, o_ref):
        # x_ref : (b_blk, c_in, T*Np)   NCHW with (T,N) flattened onto lanes
        # w_ref : (cm, kt*c_in)         fused taps, Align folded into centre
        # b_ref : (cm, 1)               f32 bias (conv + folded align)
        # o_ref : (b_blk, c_out, T*Np)
        w = w_ref[...]
        bias = b_ref[...]                                    # (cm, 1) f32

        # Per-tap validity masks ('same' zero padding).  In the flattened
        # layout the invalid region of each tap is a contiguous lane range,
        # so a single iota + compare suffices.  Hoisted out of the batch loop.
        lane = jax.lax.broadcasted_iota(jnp.int32, (c_in, L), 1)
        masks = []
        for k in range(kt):
            off = k - pad_t
            if off > 0:
                masks.append(lane < (T - off) * Np)
            elif off < 0:
                masks.append(lane >= (-off) * Np)
            else:
                masks.append(None)

        zero = jnp.zeros((), dtype)
        for b in range(b_blk):                               # static unroll
            x = x_ref[b]                                     # (c_in, L)
            parts = []
            for k in range(kt):
                off = k - pad_t
                if off == 0:
                    parts.append(x)
                else:
                    # shift by whole timesteps along the flat lane axis
                    shifted = pltpu.roll(x, shift=(-off * Np) % L, axis=1)
                    parts.append(jnp.where(masks[k], shifted, zero))
            xw = jnp.concatenate(parts, axis=0)              # (K, L)

            # Single 2-D GEMM, f32 accumulation on the MXU; bias add is a
            # broadcast VPU add hidden under the MXU.
            acc = jnp.dot(w, xw, preferred_element_type=jnp.float32) + bias

            if act == "GLU":
                # Channel split along the major (non-lane) axis.
                out = acc[:c_out] * jax.nn.sigmoid(acc[c_out:])
            elif act == "sigmoid":
                out = jax.nn.sigmoid(acc)
            else:                                            # 'relu' default
                out = jnp.maximum(acc, 0.0)

            o_ref[b] = out.astype(o_ref.dtype)

    return kernel


# ----------------------------------------------------------------------------
# Wrapper helpers
# ----------------------------------------------------------------------------
def _fold_and_pack_weights(wconv, bconv, walign, balign, *, kt, c_in, c_out,
                           dtype):
    """Fold Align into the conv; pack taps -> (cm, kt*c_in); bias -> (cm,1) f32."""
    cm = wconv.shape[-1]
    pad_t = (kt - 1) // 2
    wf = wconv.astype(jnp.float32)
    bf = jnp.reshape(bconv, (cm,)).astype(jnp.float32)
    # Align reads the un-shifted input => fold into the centre tap.  Only the
    # first c_out output columns are touched so the GLU gate half stays clean.
    wf = wf.at[pad_t, :, :c_out].add(walign.astype(jnp.float32))
    bf = bf.at[:c_out].add(jnp.reshape(balign, (c_out,)).astype(jnp.float32))
    # Tap-major packing must match the in-kernel window concat order.
    w_pack = jnp.transpose(wf, (2, 0, 1)).reshape(cm, kt * c_in).astype(dtype)
    return w_pack, bf.reshape(cm, 1)          # bias stays f32 (post-GEMM add)


def _vmem_budget_bytes():
    """~75% of physical VMEM of the current generation (fallback: v7x 64MiB)."""
    cap = 64 * 1024 * 1024
    try:
        info = pltpu.get_tpu_info()
        cap = int(getattr(info, "vmem_capacity_bytes", cap)) or cap
    except Exception:
        pass
    return max(32 << 20, min((3 * cap) // 4, 100 << 20))


def _estimate_vmem(b_blk, c_in, cm, c_out, L, K, it_in, it_out):
    inp = 2 * b_blk * c_in * L * it_in               # double-buffered input
    outp = 2 * b_blk * c_out * L * it_out            # double-buffered output
    wts = 2 * cm * K * it_in + cm * 128 * 4          # weights + lane-padded bias
    tmp = K * L * it_in + cm * L * 4 + 2 * c_in * L * it_in   # xw + f32 acc + shifts
    return inp + outp + wts + tmp


def _pick_b_block(B, fits):
    divs = [d for d in range(min(8, B), 0, -1) if B % d == 0]
    # Prefer a grid of >=2 steps so both v7x TensorCores get work.
    for d in divs:
        if fits(d) and (B // d >= 2 or B == 1):
            return d
    for d in divs:
        if fits(d):
            return d
    return None


# ----------------------------------------------------------------------------
# Public entry point
# ----------------------------------------------------------------------------
def temporal_conv_layer(x_nchw, wconv, bconv, walign, balign, *, kt, c_out,
                        act="relu", compute_dtype=None, b_block=None,
                        pad_nodes=False):
    """x_nchw: (B, c_in, T, N) -> (B, c_out, T, N)."""
    assert kt % 2 == 1, "residual add requires odd kt (same-length conv output)"
    # TODO(synk): even kt shape-mismatches in the original PyTorch residual add
    # as well, so it is intentionally unsupported.
    B, c_in, T, N = x_nchw.shape
    assert (kt - 1) // 2 < T, "temporal window must fit inside the sequence"
    cm = wconv.shape[-1]
    assert cm == (2 * c_out if act == "GLU" else c_out)

    cdt = jnp.dtype(compute_dtype) if compute_dtype is not None \
        else jnp.dtype(x_nchw.dtype)

    # Optional node padding to a 128 multiple (aligned lane rolls / fully
    # dense stores).  Off by default: the flattened T*N lane axis already
    # makes lane waste negligible and padding costs extra HBM passes.
    Np = N
    if pad_nodes and N % 128 != 0:
        Np = ((N + 127) // 128) * 128
        x_nchw = jnp.pad(x_nchw, ((0, 0), (0, 0), (0, 0), (0, Np - N)))

    L = T * Np
    K = kt * c_in
    x_flat = x_nchw.reshape(B, c_in, L).astype(cdt)   # free flatten of (T,N)

    w_pack, bias = _fold_and_pack_weights(
        wconv, bconv, walign, balign, kt=kt, c_in=c_in, c_out=c_out, dtype=cdt)

    # Generation-aware VMEM budgeting and batch-block selection.
    budget = _vmem_budget_bytes()
    it = cdt.itemsize
    fits = lambda d: _estimate_vmem(d, c_in, cm, c_out, L, K, it, it) <= budget
    if b_block is not None:
        assert B % b_block == 0
        b_blk = b_block
    else:
        b_blk = _pick_b_block(B, fits)
        if b_blk is None:
            # TODO(synk): add temporal-halo node tiling for graphs whose full
            # (c_in, T*N) slab does not fit VMEM even with b_blk = 1.
            raise ValueError("TemporalConvLayer block exceeds the VMEM budget "
                             "for this graph size; node tiling not implemented.")

    kernel = _make_kernel(act, c_out, kt, c_in, T, Np, b_blk, cdt)

    cost = pl.CostEstimate(
        flops=2 * B * cm * K * L,
        transcendentals=(B * c_out * L) if act in ("GLU", "sigmoid") else 0,
        bytes_accessed=(B * c_in * L + cm * K) * it + cm * 4
                       + B * c_out * L * it,
    )

    out_flat = pl.pallas_call(
        kernel,
        out_shape=jax.ShapeDtypeStruct((B, c_out, L), cdt),
        grid_spec=pltpu.PrefetchScalarGridSpec(
            num_scalar_prefetch=0,
            grid=(B // b_blk,),
            in_specs=[
                pl.BlockSpec((b_blk, c_in, L), lambda i: (i, 0, 0)),
                pl.BlockSpec((cm, K), lambda i: (0, 0)),
                pl.BlockSpec((cm, 1), lambda i: (0, 0)),
            ],
            out_specs=pl.BlockSpec((b_blk, c_out, L), lambda i: (i, 0, 0)),
        ),
        compiler_params=pltpu.CompilerParams(
            dimension_semantics=("parallel",),
            vmem_limit_bytes=int(budget),
        ),
        cost_estimate=cost,
    )(x_flat, w_pack, bias)

    out = out_flat.reshape(B, c_out, T, Np)
    if Np != N:
        out = out[..., :N]
    return out


# ----------------------------------------------------------------------------
# Synthetic parameters + pure-JAX reference (for verification)
# ----------------------------------------------------------------------------
def make_params(key, kt, c_in, c_out, act="relu"):
    cm = 2 * c_out if act == "GLU" else c_out
    k1, k2, k3, k4 = jax.random.split(key, 4)
    wconv = 0.1 * jax.random.normal(k1, (kt, c_in, cm), jnp.float32)
    bconv = 0.1 * jax.random.normal(k2, (1, cm), jnp.float32)
    if c_in > c_out:      # Align = Conv2d(c_in, c_out, 1)
        walign = 0.1 * jax.random.normal(k3, (c_in, c_out), jnp.float32)
        balign = 0.1 * jax.random.normal(k4, (1, c_out), jnp.float32)
    else:                 # zero channel-pad (c_in < c_out) or identity
        walign = jnp.eye(c_in, c_out, dtype=jnp.float32)
        balign = jnp.zeros((1, c_out), jnp.float32)
    return wconv, bconv, walign, balign


def reference(x_nchw, wconv, bconv, walign, balign, *, kt, c_out, act="relu"):
    B, c_in, T, N = x_nchw.shape
    pad = (kt - 1) // 2
    x = jnp.transpose(x_nchw, (0, 2, 3, 1)).astype(jnp.float32)
    xp = jnp.pad(x, ((0, 0), (pad, pad), (0, 0), (0, 0)))
    cm = wconv.shape[2]
    conv = jnp.zeros((B, T, N, cm), jnp.float32)
    for k in range(kt):
        conv = conv + jnp.einsum("btnc,cd->btnd", xp[:, k:k + T],
                                 wconv[k].astype(jnp.float32))
    conv = conv + bconv[0]
    xin = jnp.einsum("btnc,cd->btnd", x, walign.astype(jnp.float32)) + balign[0]
    if act == "GLU":
        out = (conv[..., :c_out] + xin) * jax.nn.sigmoid(conv[..., c_out:])
    elif act == "sigmoid":
        out = jax.nn.sigmoid(conv + xin)
    else:
        out = jnp.maximum(conv + xin, 0.0)
    return jnp.transpose(out, (0, 3, 1, 2))


# ----------------------------------------------------------------------------
# Demo / correctness harness
# ----------------------------------------------------------------------------
if __name__ == "__main__":
    key = jax.random.PRNGKey(0)
    kx, kp1, kp2, kp3 = jax.random.split(key, 4)

    ok = True

    def check(out, ref, shape, rtol=1e-4, atol=1e-5):
        out = np.asarray(jax.block_until_ready(out)).astype(np.float32)
        ref = np.asarray(ref, dtype=np.float32)
        return bool(np.allclose(out, ref, rtol=rtol, atol=atol)) \
            and out.shape == shape

    # Case 1: relu (default), c_in < c_out (Align zero-pad branch);
    #         auto batch-block keeps a 2-step parallel grid.
    B, c_in, T, N, c_out, kt = 2, 4, 8, 16, 8, 3
    x = jax.random.normal(kx, (B, c_in, T, N), jnp.float32)
    p = make_params(kp1, kt, c_in, c_out, act="relu")
    out = temporal_conv_layer(x, *p, kt=kt, c_out=c_out, act="relu")
    ok &= check(out, reference(x, *p, kt=kt, c_out=c_out, act="relu"),
                (B, c_out, T, N))

    # Case 2: sigmoid, c_in > c_out (Align 1x1-conv branch).
    c_in2, c_out2 = 8, 4
    x2 = jax.random.normal(kx, (B, c_in2, T, N), jnp.float32)
    p2 = make_params(kp2, kt, c_in2, c_out2, act="sigmoid")
    out2 = temporal_conv_layer(x2, *p2, kt=kt, c_out=c_out2, act="sigmoid")
    ok &= check(out2, reference(x2, *p2, kt=kt, c_out=c_out2, act="sigmoid"),
                (B, c_out2, T, N))

    # Case 3: GLU, lane-dense flat axis (N=256 -> L=2048), explicit batch
    #         block of 2 to exercise the multi-batch in-kernel loop.
    N3, c_in3, c_out3 = 256, 4, 8
    x3 = jax.random.normal(kx, (B, c_in3, T, N3), jnp.float32)
    p3 = make_params(kp3, kt, c_in3, c_out3, act="GLU")
    out3 = temporal_conv_layer(x3, *p3, kt=kt, c_out=c_out3, act="GLU",
                               b_block=2)
    ok &= check(out3, reference(x3, *p3, kt=kt, c_out=c_out3, act="GLU"),
                (B, c_out3, T, N3))

    # Case 4: bf16 compute path (f32 inputs cast at the wrapper, f32 MXU
    #         accumulation) — checked against the f32 reference at bf16 tol.
    out4 = temporal_conv_layer(x, *p, kt=kt, c_out=c_out, act="relu",
                               compute_dtype=jnp.bfloat16)
    ok &= check(out4, reference(x, *p, kt=kt, c_out=c_out, act="relu"),
                (B, c_out, T, N), rtol=4e-2, atol=4e-2)

    if ok:
        print("KERNEL_OK")
    else:
        raise SystemExit("mismatch vs reference")
</pallas_src>

<mosaic_0001>
module attributes {stable_mosaic.version = 11 : i64} {
  func.func @kernel(%arg0: i32, %arg1: memref<1x4x128xf32, #tpu.memory_space<vmem>>, %arg2: memref<8x12xf32, #tpu.memory_space<vmem>>, %arg3: memref<8x1xf32, #tpu.memory_space<vmem>>, %arg4: memref<1x8x128xf32, #tpu.memory_space<vmem>>) attributes {dimension_semantics = [#tpu.dimension_semantics<parallel>], iteration_bounds = array<i64: 2>, scalar_prefetch = 0 : i64, scratch_operands = 0 : i64, tpu.core_type = #tpu.core_type<tc>, window_params = [{transform_indices = @transform_0, window_bounds = array<i64: 1, 4, 128>}, {pipeline_mode = #tpu.pipeline_mode<synchronous>, transform_indices = @transform_1, window_bounds = array<i64: 8, 12>}, {pipeline_mode = #tpu.pipeline_mode<synchronous>, transform_indices = @transform_2, window_bounds = array<i64: 8, 1>}, {transform_indices = @transform_3, window_bounds = array<i64: 1, 8, 128>}]} {
    %c0 = arith.constant 0 : index
    %c0_0 = arith.constant 0 : index
    %0 = vector.load %arg2[%c0, %c0_0] : memref<8x12xf32, #tpu.memory_space<vmem>>, vector<8x12xf32>
    %c0_1 = arith.constant 0 : index
    %c0_2 = arith.constant 0 : index
    %1 = vector.load %arg3[%c0_1, %c0_2] : memref<8x1xf32, #tpu.memory_space<vmem>>, vector<8x1xf32>
    %2 = tpu.iota {dimensions = array<i32: 1>} : vector<4x128xi32>
    %c16_i32 = arith.constant 16 : i32
    %3 = vector.broadcast %c16_i32 : i32 to vector<4x128xi32>
    %4 = arith.cmpi sge, %2, %3 : vector<4x128xi32>
    %c112_i32 = arith.constant 112 : i32
    %5 = vector.broadcast %c112_i32 : i32 to vector<4x128xi32>
    %6 = arith.cmpi slt, %2, %5 : vector<4x128xi32>
    %c0_3 = arith.constant 0 : index
    %c0_4 = arith.constant 0 : index
    %c0_5 = arith.constant 0 : index
    %7 = vector.load %arg1[%c0_3, %c0_4, %c0_5] : memref<1x4x128xf32, #tpu.memory_space<vmem>>, vector<1x4x128xf32>
    %8 = vector.shape_cast %7 : vector<1x4x128xf32> to vector<4x128xf32>
    %c16_i32_6 = arith.constant 16 : i32
    %9 = tpu.dynamic_rotate %8 by %c16_i32_6 dim 1 : vector<4x128xf32>, i32 -> vector<4x128xf32>
    %cst = arith.constant 0.000000e+00 : f32
    %10 = vector.broadcast %cst : f32 to vector<4x128xf32>
    %11 = arith.select %4, %9, %10 : vector<4x128xi1>, vector<4x128xf32>
    %c112_i32_7 = arith.constant 112 : i32
    %12 = tpu.dynamic_rotate %8 by %c112_i32_7 dim 1 : vector<4x128xf32>, i32 -> vector<4x128xf32>
    %cst_8 = arith.constant 0.000000e+00 : f32
    %13 = vector.broadcast %cst_8 : f32 to vector<4x128xf32>
    %14 = arith.select %6, %12, %13 : vector<4x128xi1>, vector<4x128xf32>
    %15 = tpu.concatenate %11, %8, %14 in 0 : vector<4x128xf32>, vector<4x128xf32>, vector<4x128xf32> -> vector<12x128xf32>
    %cst_9 = arith.constant dense<0.000000e+00> : vector<8x128xf32>
    %16 = tpu.matmul %0, %15, %cst_9 {dimension_numbers = #tpu.dot_dimension_numbers<[1], [0], [0], [1], [0, 0, 1, 1], [], []>} : vector<8x12xf32>, vector<12x128xf32>, vector<8x128xf32> -> vector<8x128xf32>
    %17 = vector.broadcast %1 : vector<8x1xf32> to vector<8x128xf32>
    %18 = arith.addf %16, %17 : vector<8x128xf32>
    %cst_10 = arith.constant 0.000000e+00 : f32
    %19 = vector.broadcast %cst_10 : f32 to vector<8x128xf32>
    %20 = arith.maximumf %18, %19 : vector<8x128xf32>
    %c0_11 = arith.constant 0 : index
    %c0_12 = arith.constant 0 : index
    %c0_13 = arith.constant 0 : index
    %21 = vector.load %arg4[%c0_11, %c0_12, %c0_13] : memref<1x8x128xf32, #tpu.memory_space<vmem>>, vector<1x8x128xf32>
    %22 = vector.shape_cast %21 : vector<1x8x128xf32> to vector<8x128xf32>
    %23 = vector.shape_cast %20 : vector<8x128xf32> to vector<1x8x128xf32>
    tpu.vector_store %arg4[%c0_11, %c0_12, %c0_13], %23 {strides = array<i32>} : memref<1x8x128xf32, #tpu.memory_space<vmem>>, vector<1x8x128xf32>,
    return
  }
  func.func @transform_0(%arg0: i32) -> (i32, i32, i32) {
    %c0_i32 = arith.constant 0 : i32
    %c0_i32_0 = arith.constant 0 : i32
    %c0_i32_1 = arith.constant 0 : i32
    return %arg0, %c0_i32, %c0_i32_0 : i32, i32, i32
  }
  func.func @transform_1(%arg0: i32) -> (i32, i32) {
    %c0_i32 = arith.constant 0 : i32
    %c0_i32_0 = arith.constant 0 : i32
    %c0_i32_1 = arith.constant 0 : i32
    return %c0_i32, %c0_i32_0 : i32, i32
  }
  func.func @transform_2(%arg0: i32) -> (i32, i32) {
    %c0_i32 = arith.constant 0 : i32
    %c0_i32_0 = arith.constant 0 : i32
    %c0_i32_1 = arith.constant 0 : i32
    return %c0_i32, %c0_i32_0 : i32, i32
  }
  func.func @transform_3(%arg0: i32) -> (i32, i32, i32) {
    %c0_i32 = arith.constant 0 : i32
    %c0_i32_0 = arith.constant 0 : i32
    %c0_i32_1 = arith.constant 0 : i32
    return %arg0, %c0_i32, %c0_i32_0 : i32, i32, i32
  }
}

</mosaic_0001>

<bundles_post_ra>
// kernel: tpu_custom_call.1
= control target key start
LH: loop header
LB: loop body
LE: loop exit
PB: predicated region body
PF: predicated region fallthrough
CT: control target
= control target key end

     0   :  { %8 = vsyncpa [#allocation3], 0  ;;  %s716_s0 = inlined_call_operand.vmem [shape: f32[2,4,128], index: 0, kind: input, shape index: {}]   ;;  %s717_s1 = inlined_call_operand.hbm [shape: f32[8,12], index: 1, kind: input, shape index: {}]   ;;  %s718_s2 = inlined_call_operand.vmem [shape: f32[8,1], index: 2, kind: input, shape index: {}]   ;;  %s719_s3 = inlined_call_operand.hbm [shape: f32[2,8,128], index: 3, kind: output, shape index: {}]  }
   0x1   :  { %9 = vsyncpa [#allocation4], 0 }
   0x2   :  { %11 = vsyncpa [#allocation4 + $0x1], 0  ;;  %s578_s12 = smov 0   ;;  %s580_s13 = smov 0  }
   0x3   :  { %s582_s14 = smov 0   ;;  %s584_s15 = smov 0  }
   0x4 LB: > { %s599_s16 = sadd.s32 4294967295, %s547_s15   ;;  %s366_s17 = sadd.s32 4294967294, %s547_s15   ;;  %s547_s15 = sphi %s584_s15, %s735_s15   ;;  %s543_s14 = sphi %s582_s14, %s734_s14   ;;  %s539_s13 = sphi %s580_s13, %s733_s13   ;;  %s535_s12 = sphi %s578_s12, %s732_s12  }
   0x5   : > { %s603_s18 = sadd.s32 1, %s547_s15   ;;  %s92_s19 = sadd.s32 1, %s543_s14 }
   0x6   : > { %s89_s20 = ssub.s32 %s547_s15, %s603_s18  ;;  %p102_p0 = scmp.ne.s32.totalorder %s543_s14, %s539_s13 }
   0x7   : > { %p90_p1 = scmp.eq.s32.totalorder %s89_s20, 0  ;;  %p103_p2 = scmp.eq.s32.totalorder %s599_s16, 1 }
   0x8   : > { %p108_p3 = scmp.ne.s32.totalorder %s539_s13, %s535_s12  ;;  %p109_p4 = scmp.eq.s32.totalorder %s366_s17, 1 }
   0x9   : > { %s614_s21 = scalar_select %p90_p1, %s543_s14, %s92_s19  }
   0xa   : > { %p616_p5 = por %p103_p2, %p102_p0  ;;  %p620_p6 = por %p109_p4, %p108_p3 }
   0xb   : > { %p367_p7 = scmp.ge.s32.totalorder %s547_s15, 1  ;;  %p116_p8 = scmp.lt.s32.totalorder %s547_s15, 3 }
   0xc   : > { %s723_s22 = scalar_select %p616_p5, 1, 0 }
   0xd   : > { %s724_s23 = scalar_select %p620_p6, 1, 0 }
   0xe   : > { %p720_p9 = scmp.eq.s32.totalorder %s599_s16, 0  ;;  %p627_p10 = pnand %p367_p7, %p116_p8 }
   0xf   : > { %s549_s25 = smov [#allocation2]   ;;  %s453_s30 = scalar_lea.hbm %s717_s1, 128 }
  0x10   : > { %s725_s24 = scalar_select %p627_p10, 1, 0 }
  0x11   : > { %s129_s26 = sshll.u32 %s549_s25, 4  ;;  %p400_p11 = pneg %p627_p10  ;;  %s130_s26 = int_to_ptr.vmem [resolvable:$true] %s129_s26 }
  0x12   : > { %p454_p13 = scmp.ne.s32.totalorder %s717_s1, %s453_s30  ;;  %p460_p3 = scmp.lt.u32.totalorder %s453_s30, %s717_s1 }
  0x13   : > { %p635_p12 = pnand %p720_p9, %p400_p11 }
  0x15   : > { %p455_p0 = pneg %p635_p12 }
  0x17   : > { %p456_p1 = pnand %p455_p0, %p454_p13 }
  0x19   : > { %p457_p2 = pneg %p456_p1 }
  0x1b   : > { %p462_p4 = pnand %p460_p3, %p457_p2 }
  0x1d   : > { %465 = shalt.err (!%p462_p4)
}
  0x1e   : > { %s466_s8 = scalar_lea.vmem %s130_s26, 128  ;;  %p474_p9 = scmp.lt.s32.totalorder %s130_s26, %s130_s26 }
  0x1f   : > { %p467_p7 = scmp.ne.s32.totalorder %s130_s26, %s466_s8  ;;  %p475_p6 = scmp.lt.s32.totalorder %s466_s8, %s466_s8 }
  0x21   : > { %p469_p8 = pnand %p467_p7, %p455_p0  ;;  %p476_p5 = por %p475_p6, %p474_p9 }
  0x23   : > { %p470_p11 = pneg %p469_p8 }
  0x25   : > { %p477_p10 = pnand %p476_p5, %p470_p11 }
  0x27   : > { %480 = shalt.err (!%p477_p10)
}
  0x28   : > { %403 = dma.hbm_to_vmem [thread:$0]  (!%p635_p12), %s717_s1, 128, %s130_s26, [#allocation3]  }
  0x29   : > { %p727_p13 = scmp.ne.s32.totalorder %s725_s24, 0 }
  0x2a   : > { %p728_p1 = scmp.eq.s32.totalorder (!%p727_p13), %s599_s16, 0 }
  0x2b   : > { %152 = sbr.rel (%p727_p13) target bundleno = 413 (0x19d), region = 32 }
  0x32   : > { %526 = dma.done.wait (%p728_p1), [#allocation3], 128   ;;  %p729_p0 = pmov %p728_p1 }
  0x33   : > { %p175_p6 = scmp.lt.s32.totalorder %s599_s16, 1  ;;  %v550_v0 = vmov 0.0|0.0   ;;  %vm551_vm0 = vmmov 0   ;;  %v552_v1 = vmov 0.0   ;;  %v553_v2 = vmov 0   ;;  %v180_v4 = vld [vmem:[%s718_s2] sm:$0xff] }
  0x34   : > { %528 = vsyncadd (%p729_p0), [#allocation3], 4294967168  ;;  %390 = vmatprep.subr.bf16.mxu0 %v550_v0  ;;  %387 = vmatprep.mubr.msk.f32.mxu0 %vm551_vm0, %v552_v1  ;;  %s554_s27 = smov 16   ;;  %s555_s28 = smov 112   ;;  %v181_v5 = vlaneseq  ;;  %vm195_vm3 = vcmask 1043456   ;;  %vm556_vm4 = vmmov 1  }
  0x35   : > { %s176_s11 = scalar_select %p175_p6, %s599_s16, 1  ;;  %451 = vset.pattern.permute.xlu1 %v553_v2  ;;  %452 = vset.pattern.permute.xlu0 %v553_v2  ;;  %vm392_vm5 = vmpackc.low %vm195_vm3, %vm556_vm4  ;;  %v179_v14 = vld [vmem:[#allocation2] sm:$0xff]  ;;  %vm202_vm6 = vcmask 97280  }
  0x36   : > { %199 = vperm.xlu1 %451, %v180_v4   ;;  %v182_v6 = vand.u32 127, %v181_v5  ;;  %s172_s29 = sand.u32 1, %s539_s13   ;;  %s377_s4 = sshll.u32 %s599_s16, 7 }
  0x37   : > { %s373_s17 = sshll.u32 %s176_s11, 2  ;;  %s372_s30 = sshll.u32 %s172_s29, 3 }
  0x38   : > { %s178_s24 = scalar_lea.vmem %s716_s0, %s373_s17  ;;  %vm183_vm1 = vcmp.ge.s32.totalorder %v182_v6, 16  ;;  %vm184_vm2 = vcmp.lt.s32.totalorder %v182_v6, 112  ;;  %s174_s5 = scalar_lea.vmem [#allocation5], %s372_s30 }
  0x39   : > { %v185_v3 = vld [vmem:[%s178_s24] sm:$0xf]  ;;  %s295_s6 = sshll.u32 %s174_s5, 4  ;;  %s674_s9 = scalar_lea.hbm %s719_s3, %s377_s4  ;;  %s676_s6 = int_to_ptr.vmem [resolvable:$true] %s295_s6 }
  0x3a   : > { %186 = vrot.lane.b32.xlu0 %v185_v3, %s554_s27  ;;  %v193_v8 = vrot.slane %v185_v3, 4  ;;  %s282_s10 = scalar_lea.sflag [#allocation4], %s172_s29  ;;  %s481_s11 = scalar_lea.vmem %s676_s6, 128 }
  0x3b   : > { %p482_p5 = scmp.ne.s32.totalorder %s676_s6, %s481_s11  ;;  %p730_p9 = scmp.ne.s32.totalorder %s723_s22, 0 }
  0x3c   : > { %s557_s16 = smov [#allocation5]  }
  0x3d   : > { %p483_p10 = pnand %p482_p5, %p730_p9  ;;  %s485_s17 = sshll.u32 %s557_s16, 4  ;;  %s486_s17 = int_to_ptr.vmem [resolvable:$false] %s485_s17 }
  0x3e   : > { %189 = vrot.lane.b32.xlu0 %v185_v3, %s555_s28  ;;  %s487_s19 = scalar_lea.vmem %s486_s17, 256  ;;  %p488_p2 = scmp.lt.s32.totalorder %s676_s6, %s486_s17 }
  0x3f   : > { %p484_p12 = pneg %p483_p10  ;;  %p489_p3 = scmp.lt.s32.totalorder %s487_s19, %s481_s11 }
  0x41   : > { %p490_p4 = por %p489_p3, %p488_p2 }
  0x43   : > { %p491_p7 = pnand %p490_p4, %p484_p12 }
  0xac   : > { %v187_v7 = vpop.permute.xlu0 %186 }
  0xad   : > { %v188_v9 = vsel %vm183_vm1, %v187_v7, 0.0 }
  0xae   : > { %v196_v12 = vsel %vm195_vm3, %v188_v9, %v193_v8 }
  0xb0   : > { %v190_v10 = vpop.permute.xlu0 %189 }
  0xb1   : > { %v191_v11 = vsel %vm184_vm2, %v190_v10, 0.0 }
  0xb2   : > { %v391_v13 = vpack.c.bf16 %v191_v11, %v196_v12 }
  0xb4   : > { %393 = vmatpush3.bf16.msk.msra.mxu0 %vm392_vm5, %v391_v13 }
  0xb5   : > { %v200_v15 = vpop.permute.xlu1 %199 }
  0xb7   : > { %388 = vmatmul.mubr.msk.f32.vlgmr.msra.gmra.mrb[0].mxu0 %vm202_vm6, %v179_v14 }
 0x18a   : > { %v275_v16 = vpop.f32.mrb[0].mxu0 }
 0x18b   : > { %v276_v17 = vadd.f32 %v275_v16, %v200_v15  ;;  %v389_v18 = vpop.f32.mrb[1].mxu0 }
 0x18d   : > { %v279_v19 = vmax.f32 %v276_v17, 0.0 }
 0x18f   : > { %280 = vst [vmem:[%s174_s5] sm:$0xff] %v279_v19 }
 0x190   : > { %494 = shalt.err (!%p491_p7)
}
 0x191   : > { %s495_s20 = scalar_lea.hbm %s674_s9, 128  ;;  %s499_s26 = scalar_lea.hbm %s719_s3, 256 }
 0x192   : > { %p496_p8 = scmp.ne.s32.totalorder %s674_s9, %s495_s20  ;;  %p500_p1 = scmp.lt.u32.totalorder %s674_s9, %s719_s3 }
 0x193   : > { %p501_p0 = scmp.lt.u32.totalorder %s499_s26, %s495_s20  ;;  %p503_p5 = scmp.lt.u32.totalorder %s495_s20, %s674_s9 }
 0x194   : > { %p497_p11 = pnand %p496_p8, %p730_p9 }
 0x195   : > { %p502_p6 = por %p501_p0, %p500_p1 }
 0x196   : > { %p498_p13 = pneg %p497_p11 }
 0x197   : > { %p504_p10 = por %p503_p5, %p502_p6 }
 0x199   : > { %p505_p12 = pnand %p504_p10, %p498_p13 }
 0x19b   : > { %508 = shalt.err (!%p505_p12)
}
 0x19c   : > { %398 = dma.vmem_to_hbm [thread:$0]  (%p730_p9), %s676_s6, 128, %s674_s9, %s282_s10  }
 0x19d PF: > { %p410_p2 = scmp.ge.s32.totalorder %s547_s15, 2  ;;  %s307_s29 = sand.u32 1, %s535_s12  }
 0x19e   : > { %p731_p3 = scmp.ne.s32.totalorder %s724_s23, 0  ;;  %s308_s30 = scalar_lea.sflag [#allocation4], %s307_s29 }
 0x1a0   : > { %p405_p4 = pnand %p410_p2, %p731_p3 }
 0x1a2   : > { %530 = dma.done.wait (!%p405_p4), %s308_s30, 128  }
 0x1a3   : > { %532 = vsyncadd (!%p405_p4), %s308_s30, 4294967168  ;;  %p14_p7 = scmp.ge.s32.totalorder %s603_s18, 4   ;;  %s732_s12 = smov %s539_s13 }
 0x1a4   : > { %s733_s13 = smov %s543_s14  ;;  %s734_s14 = smov %s614_s21 }
 0x1a5   : > { %s735_s15 = smov %s603_s18  ;;  %16 = sbr.rel (!%p14_p7) target bundleno = 4 (0x4), region = 72 }
 0x1ac   :  { %313 = vsyncpa [#allocation3], 1 }
 0x1ad   :  { %315 = vsyncpa [#allocation3 + $0x1], 1 }
 0x1ae   :  { %316 = vsyncpa [#allocation4], 1 }
 0x1af   :  { %318 = vsyncpa [#allocation4 + $0x1], 1 }

</bundles_post_ra>
